<compile_context>
chip_gen: v7x
topology: tpu7x:2x2x1
jax: 0.10.0
libtpu: 0.0.40
codegen_flags: <defaults>
</compile_context>

<pallas_src>
import functools

import jax
import jax.numpy as jnp
from jax.experimental import pallas as pl
from jax.experimental.pallas import tpu as pltpu


LEAKY_SLOPE = 0.01
BN_EPS = 1e-5

# Row layout of the packed small-vector array (16, 128) f32:
#   0: gamma1  1: beta1   2: gamma2  3: beta2
#   4: gamma3  5: beta3   6: gamma4  7: beta4
#   8: b5      9..15: unused (zero)
_VEC_ROWS = 16
_HID = 128          # physical (padded) feature width of every layer
_N_LAYERS = 5


def qnetwork_kernel(x_ref, w_ref, vec_ref, out_ref):
    """x_ref: (B,128) bf16; w_ref: (128, 640) bf16; vec_ref: (16,128) f32;
    out_ref: (B,128) f32."""
    v = vec_ref[...]                                   # one (16,128) f32 load

    def bn_lrelu(h, gi, bi):
        # h: (B,128) f32.  Training-mode BN (batch mean, biased var) + LeakyReLU.
        gamma = v[gi:gi + 1, :]                        # (1,128)
        beta = v[bi:bi + 1, :]                         # (1,128)
        mean = jnp.mean(h, axis=0, keepdims=True)
        var = jnp.mean(h * h, axis=0, keepdims=True) - mean * mean
        scale = gamma * jax.lax.rsqrt(var + BN_EPS)    # rsqrt -> EUP slot
        shift = beta - mean * scale
        h = h * scale + shift
        return jnp.maximum(h, LEAKY_SLOPE * h)         # leaky relu: mul + max

    h = x_ref[...]                                     # (B,128) bf16
    for li in range(4):
        w = w_ref[:, _HID * li:_HID * (li + 1)]        # lane-aligned static Ref slice
        h32 = jnp.dot(h, w, preferred_element_type=jnp.float32)   # bf16 MXU, f32 acc
        h32 = bn_lrelu(h32, 2 * li, 2 * li + 1)
        h = h32.astype(jnp.bfloat16)                   # bf16 operand for next matmul

    # fc5: padded (128 -> 128) weight block + packed bias row; lane-dense store.
    w5 = w_ref[:, _HID * 4:_HID * 5]
    out = jnp.dot(h, w5, preferred_element_type=jnp.float32) + v[8:9, :]
    out_ref[...] = out.astype(out_ref.dtype)


@functools.partial(jax.jit, static_argnames=("action_size",))
def qnetwork_forward(x, params, *, action_size):
    """x: (B, state_size) f32.  params: (w_slab (128,640) bf16, vecs (16,128) f32)."""
    w_slab, vecs = params
    B, S = x.shape
    # Pad features to 128 lanes + cast the MXU operand to bf16 (f32 accumulate
    # happens inside the kernel; BN math stays f32).
    x_pad = jnp.zeros((B, _HID), jnp.bfloat16).at[:, :S].set(x.astype(jnp.bfloat16))

    vmem = pl.BlockSpec(memory_space=pltpu.MemorySpace.VMEM)
    out = pl.pallas_call(
        qnetwork_kernel,
        out_shape=jax.ShapeDtypeStruct((B, _HID), jnp.float32),
        in_specs=[vmem, vmem, vmem],   # 3 input DMAs total
        out_specs=vmem,
    )(x_pad, w_slab, vecs)
    return out[:, :action_size]


def init_params(state_size, action_size, seed=0):
    """Deterministic init mimicking nn.Linear default U(-1/sqrt(fan_in), +).

    Returns:
      w_slab: (128, 640) bf16 — W1..W5 stored (in, out), zero-padded to
              (128, 128) each and lane-concatenated.
      vecs:   (16, 128)  f32 — gamma/beta for bn1..bn4 (zero-padded past
              fan_out) and the fc5 bias.
    fc1..fc4 biases are not materialized (inert under training-mode BatchNorm).
    """
    assert state_size <= _HID and action_size <= _HID
    key = jax.random.PRNGKey(seed)
    dims = [state_size, 128, 64, 64, 32, action_size]

    blocks = []
    vec_rows = []
    for li in range(_N_LAYERS):
        fan_in, fan_out = dims[li], dims[li + 1]
        key, kw, kb = jax.random.split(key, 3)
        bound = fan_in ** -0.5
        W = jax.random.uniform(kw, (fan_in, fan_out), jnp.float32, -bound, bound)
        Wp = jnp.zeros((_HID, _HID), jnp.float32).at[:fan_in, :fan_out].set(W)
        blocks.append(Wp)
        if li < 4:
            # Padding invariant: gamma MUST be exactly 0 on lanes >= fan_out so
            # padded lanes stay 0 through BN (var=0 there -> rsqrt(eps) is huge).
            gamma = jnp.zeros((_HID,), jnp.float32).at[:fan_out].set(1.0)
            beta = jnp.zeros((_HID,), jnp.float32)
            vec_rows.extend([gamma, beta])
        else:
            b5 = jax.random.uniform(kb, (fan_out,), jnp.float32, -bound, bound)
            vec_rows.append(jnp.zeros((_HID,), jnp.float32).at[:fan_out].set(b5))

    while len(vec_rows) < _VEC_ROWS:
        vec_rows.append(jnp.zeros((_HID,), jnp.float32))

    w_slab = jnp.concatenate(blocks, axis=1).astype(jnp.bfloat16)   # (128, 640)
    vecs = jnp.stack(vec_rows)                                      # (16, 128)
    return w_slab, vecs


def _reference_forward(x, params, action_size):
    """Pure-JAX reference mirroring PyTorch training-mode semantics (centered
    variance, where-based LeakyReLU) with the same bf16-MXU-operand policy as
    the kernel."""
    w_slab, vecs = params
    B, S = x.shape
    h = jnp.zeros((B, _HID), jnp.bfloat16).at[:, :S].set(x.astype(jnp.bfloat16))

    def bn_lrelu(h, gi, bi):
        gamma = vecs[gi:gi + 1, :]
        beta = vecs[bi:bi + 1, :]
        mean = jnp.mean(h, axis=0, keepdims=True)
        var = jnp.mean((h - mean) ** 2, axis=0, keepdims=True)   # centered form
        h = (h - mean) * jax.lax.rsqrt(var + BN_EPS) * gamma + beta
        return jnp.where(h >= 0, h, LEAKY_SLOPE * h)

    for li in range(4):
        w = w_slab[:, _HID * li:_HID * (li + 1)]
        h = bn_lrelu(jnp.dot(h, w, preferred_element_type=jnp.float32),
                     2 * li, 2 * li + 1)
        h = h.astype(jnp.bfloat16)
    h = jnp.dot(h, w_slab[:, _HID * 4:_HID * 5],
                preferred_element_type=jnp.float32) + vecs[8:9, :]
    return h[:, :action_size]


if __name__ == "__main__":
    state_size = 16
    action_size = 4
    batch = 8

    params = init_params(state_size, action_size, seed=0)

    key = jax.random.PRNGKey(0)
    x = jax.random.normal(key, (batch, state_size), dtype=jnp.float32)

    out = qnetwork_forward(x, params, action_size=action_size)
    out = jax.block_until_ready(out)

    assert out.shape == (batch, action_size), out.shape
    assert bool(jnp.all(jnp.isfinite(out)))

    ref = _reference_forward(x, params, action_size)
    assert jnp.allclose(out, ref, rtol=2e-3, atol=2e-3), (
        float(jnp.max(jnp.abs(out - ref))))

    print("KERNEL_OK")
</pallas_src>

<mosaic_0001>
module attributes {stable_mosaic.version = 11 : i64} {
  func.func @qnetwork_kernel(%arg0: memref<8x128xbf16, #tpu.memory_space<vmem>>, %arg1: memref<128x640xbf16, #tpu.memory_space<vmem>>, %arg2: memref<16x128xf32, #tpu.memory_space<vmem>>, %arg3: memref<8x128xf32, #tpu.memory_space<vmem>>) attributes {dimension_semantics = [], scalar_prefetch = 0 : i64, scratch_operands = 0 : i64, tpu.core_type = #tpu.core_type<tc>} {
    %c0 = arith.constant 0 : index
    %c0_0 = arith.constant 0 : index
    %0 = vector.load %arg2[%c0, %c0_0] : memref<16x128xf32, #tpu.memory_space<vmem>>, vector<16x128xf32>
    %c0_1 = arith.constant 0 : index
    %c0_2 = arith.constant 0 : index
    %1 = vector.load %arg0[%c0_1, %c0_2] : memref<8x128xbf16, #tpu.memory_space<vmem>>, vector<8x128xbf16>
    %c0_3 = arith.constant 0 : index
    %c0_4 = arith.constant 0 : index
    %2 = vector.load %arg1[%c0_3, %c0_4] : memref<128x640xbf16, #tpu.memory_space<vmem>>, vector<128x128xbf16>
    %cst = arith.constant dense<0.000000e+00> : vector<8x128xf32>
    %3 = tpu.matmul %1, %2, %cst {dimension_numbers = #tpu.dot_dimension_numbers<[1], [0], [0], [1], [0, 0, 1, 1], [], []>} : vector<8x128xbf16>, vector<128x128xbf16>, vector<8x128xf32> -> vector<8x128xf32>
    %4 = vector.extract_strided_slice %0 {offsets = [0, 0], sizes = [1, 128], strides = [1, 1]} : vector<16x128xf32> to vector<1x128xf32>
    %5 = vector.extract_strided_slice %0 {offsets = [1, 0], sizes = [1, 128], strides = [1, 1]} : vector<16x128xf32> to vector<1x128xf32>
    %cst_5 = arith.constant dense<0.000000e+00> : vector<128xf32>
    %6 = vector.multi_reduction <add>, %3, %cst_5 [0] : vector<8x128xf32> to vector<128xf32>
    %7 = vector.shape_cast %6 : vector<128xf32> to vector<1x128xf32>
    %cst_6 = arith.constant 8.000000e+00 : f32
    %8 = vector.broadcast %cst_6 : f32 to vector<1x128xf32>
    %9 = arith.divf %7, %8 : vector<1x128xf32>
    %10 = arith.mulf %3, %3 : vector<8x128xf32>
    %cst_7 = arith.constant dense<0.000000e+00> : vector<128xf32>
    %11 = vector.multi_reduction <add>, %10, %cst_7 [0] : vector<8x128xf32> to vector<128xf32>
    %12 = vector.shape_cast %11 : vector<128xf32> to vector<1x128xf32>
    %cst_8 = arith.constant 8.000000e+00 : f32
    %13 = vector.broadcast %cst_8 : f32 to vector<1x128xf32>
    %14 = arith.divf %12, %13 : vector<1x128xf32>
    %15 = arith.mulf %9, %9 : vector<1x128xf32>
    %16 = arith.subf %14, %15 : vector<1x128xf32>
    %cst_9 = arith.constant 9.99999974E-6 : f32
    %17 = vector.broadcast %cst_9 : f32 to vector<1x128xf32>
    %18 = arith.addf %16, %17 : vector<1x128xf32>
    %19 = math.rsqrt %18 : vector<1x128xf32>
    %20 = arith.mulf %4, %19 : vector<1x128xf32>
    %21 = arith.mulf %9, %20 : vector<1x128xf32>
    %22 = arith.subf %5, %21 : vector<1x128xf32>
    %23 = vector.broadcast %20 : vector<1x128xf32> to vector<8x128xf32>
    %24 = arith.mulf %3, %23 : vector<8x128xf32>
    %25 = vector.broadcast %22 : vector<1x128xf32> to vector<8x128xf32>
    %26 = arith.addf %24, %25 : vector<8x128xf32>
    %cst_10 = arith.constant 0.00999999977 : f32
    %27 = vector.broadcast %cst_10 : f32 to vector<8x128xf32>
    %28 = arith.mulf %27, %26 : vector<8x128xf32>
    %29 = arith.maximumf %26, %28 : vector<8x128xf32>
    %30 = arith.truncf %29 : vector<8x128xf32> to vector<8x128xbf16>
    %c0_11 = arith.constant 0 : index
    %c128 = arith.constant 128 : index
    %31 = vector.load %arg1[%c0_11, %c128] : memref<128x640xbf16, #tpu.memory_space<vmem>>, vector<128x128xbf16>
    %cst_12 = arith.constant dense<0.000000e+00> : vector<8x128xf32>
    %32 = tpu.matmul %30, %31, %cst_12 {dimension_numbers = #tpu.dot_dimension_numbers<[1], [0], [0], [1], [0, 0, 1, 1], [], []>} : vector<8x128xbf16>, vector<128x128xbf16>, vector<8x128xf32> -> vector<8x128xf32>
    %33 = vector.extract_strided_slice %0 {offsets = [2, 0], sizes = [1, 128], strides = [1, 1]} : vector<16x128xf32> to vector<1x128xf32>
    %34 = vector.extract_strided_slice %0 {offsets = [3, 0], sizes = [1, 128], strides = [1, 1]} : vector<16x128xf32> to vector<1x128xf32>
    %cst_13 = arith.constant dense<0.000000e+00> : vector<128xf32>
    %35 = vector.multi_reduction <add>, %32, %cst_13 [0] : vector<8x128xf32> to vector<128xf32>
    %36 = vector.shape_cast %35 : vector<128xf32> to vector<1x128xf32>
    %cst_14 = arith.constant 8.000000e+00 : f32
    %37 = vector.broadcast %cst_14 : f32 to vector<1x128xf32>
    %38 = arith.divf %36, %37 : vector<1x128xf32>
    %39 = arith.mulf %32, %32 : vector<8x128xf32>
    %cst_15 = arith.constant dense<0.000000e+00> : vector<128xf32>
    %40 = vector.multi_reduction <add>, %39, %cst_15 [0] : vector<8x128xf32> to vector<128xf32>
    %41 = vector.shape_cast %40 : vector<128xf32> to vector<1x128xf32>
    %cst_16 = arith.constant 8.000000e+00 : f32
    %42 = vector.broadcast %cst_16 : f32 to vector<1x128xf32>
    %43 = arith.divf %41, %42 : vector<1x128xf32>
    %44 = arith.mulf %38, %38 : vector<1x128xf32>
    %45 = arith.subf %43, %44 : vector<1x128xf32>
    %cst_17 = arith.constant 9.99999974E-6 : f32
    %46 = vector.broadcast %cst_17 : f32 to vector<1x128xf32>
    %47 = arith.addf %45, %46 : vector<1x128xf32>
    %48 = math.rsqrt %47 : vector<1x128xf32>
    %49 = arith.mulf %33, %48 : vector<1x128xf32>
    %50 = arith.mulf %38, %49 : vector<1x128xf32>
    %51 = arith.subf %34, %50 : vector<1x128xf32>
    %52 = vector.broadcast %49 : vector<1x128xf32> to vector<8x128xf32>
    %53 = arith.mulf %32, %52 : vector<8x128xf32>
    %54 = vector.broadcast %51 : vector<1x128xf32> to vector<8x128xf32>
    %55 = arith.addf %53, %54 : vector<8x128xf32>
    %cst_18 = arith.constant 0.00999999977 : f32
    %56 = vector.broadcast %cst_18 : f32 to vector<8x128xf32>
    %57 = arith.mulf %56, %55 : vector<8x128xf32>
    %58 = arith.maximumf %55, %57 : vector<8x128xf32>
    %59 = arith.truncf %58 : vector<8x128xf32> to vector<8x128xbf16>
    %c0_19 = arith.constant 0 : index
    %c256 = arith.constant 256 : index
    %60 = vector.load %arg1[%c0_19, %c256] : memref<128x640xbf16, #tpu.memory_space<vmem>>, vector<128x128xbf16>
    %cst_20 = arith.constant dense<0.000000e+00> : vector<8x128xf32>
    %61 = tpu.matmul %59, %60, %cst_20 {dimension_numbers = #tpu.dot_dimension_numbers<[1], [0], [0], [1], [0, 0, 1, 1], [], []>} : vector<8x128xbf16>, vector<128x128xbf16>, vector<8x128xf32> -> vector<8x128xf32>
    %62 = vector.extract_strided_slice %0 {offsets = [4, 0], sizes = [1, 128], strides = [1, 1]} : vector<16x128xf32> to vector<1x128xf32>
    %63 = vector.extract_strided_slice %0 {offsets = [5, 0], sizes = [1, 128], strides = [1, 1]} : vector<16x128xf32> to vector<1x128xf32>
    %cst_21 = arith.constant dense<0.000000e+00> : vector<128xf32>
    %64 = vector.multi_reduction <add>, %61, %cst_21 [0] : vector<8x128xf32> to vector<128xf32>
    %65 = vector.shape_cast %64 : vector<128xf32> to vector<1x128xf32>
    %cst_22 = arith.constant 8.000000e+00 : f32
    %66 = vector.broadcast %cst_22 : f32 to vector<1x128xf32>
    %67 = arith.divf %65, %66 : vector<1x128xf32>
    %68 = arith.mulf %61, %61 : vector<8x128xf32>
    %cst_23 = arith.constant dense<0.000000e+00> : vector<128xf32>
    %69 = vector.multi_reduction <add>, %68, %cst_23 [0] : vector<8x128xf32> to vector<128xf32>
    %70 = vector.shape_cast %69 : vector<128xf32> to vector<1x128xf32>
    %cst_24 = arith.constant 8.000000e+00 : f32
    %71 = vector.broadcast %cst_24 : f32 to vector<1x128xf32>
    %72 = arith.divf %70, %71 : vector<1x128xf32>
    %73 = arith.mulf %67, %67 : vector<1x128xf32>
    %74 = arith.subf %72, %73 : vector<1x128xf32>
    %cst_25 = arith.constant 9.99999974E-6 : f32
    %75 = vector.broadcast %cst_25 : f32 to vector<1x128xf32>
    %76 = arith.addf %74, %75 : vector<1x128xf32>
    %77 = math.rsqrt %76 : vector<1x128xf32>
    %78 = arith.mulf %62, %77 : vector<1x128xf32>
    %79 = arith.mulf %67, %78 : vector<1x128xf32>
    %80 = arith.subf %63, %79 : vector<1x128xf32>
    %81 = vector.broadcast %78 : vector<1x128xf32> to vector<8x128xf32>
    %82 = arith.mulf %61, %81 : vector<8x128xf32>
    %83 = vector.broadcast %80 : vector<1x128xf32> to vector<8x128xf32>
    %84 = arith.addf %82, %83 : vector<8x128xf32>
    %cst_26 = arith.constant 0.00999999977 : f32
    %85 = vector.broadcast %cst_26 : f32 to vector<8x128xf32>
    %86 = arith.mulf %85, %84 : vector<8x128xf32>
    %87 = arith.maximumf %84, %86 : vector<8x128xf32>
    %88 = arith.truncf %87 : vector<8x128xf32> to vector<8x128xbf16>
    %c0_27 = arith.constant 0 : index
    %c384 = arith.constant 384 : index
    %89 = vector.load %arg1[%c0_27, %c384] : memref<128x640xbf16, #tpu.memory_space<vmem>>, vector<128x128xbf16>
    %cst_28 = arith.constant dense<0.000000e+00> : vector<8x128xf32>
    %90 = tpu.matmul %88, %89, %cst_28 {dimension_numbers = #tpu.dot_dimension_numbers<[1], [0], [0], [1], [0, 0, 1, 1], [], []>} : vector<8x128xbf16>, vector<128x128xbf16>, vector<8x128xf32> -> vector<8x128xf32>
    %91 = vector.extract_strided_slice %0 {offsets = [6, 0], sizes = [1, 128], strides = [1, 1]} : vector<16x128xf32> to vector<1x128xf32>
    %92 = vector.extract_strided_slice %0 {offsets = [7, 0], sizes = [1, 128], strides = [1, 1]} : vector<16x128xf32> to vector<1x128xf32>
    %cst_29 = arith.constant dense<0.000000e+00> : vector<128xf32>
    %93 = vector.multi_reduction <add>, %90, %cst_29 [0] : vector<8x128xf32> to vector<128xf32>
    %94 = vector.shape_cast %93 : vector<128xf32> to vector<1x128xf32>
    %cst_30 = arith.constant 8.000000e+00 : f32
    %95 = vector.broadcast %cst_30 : f32 to vector<1x128xf32>
    %96 = arith.divf %94, %95 : vector<1x128xf32>
    %97 = arith.mulf %90, %90 : vector<8x128xf32>
    %cst_31 = arith.constant dense<0.000000e+00> : vector<128xf32>
    %98 = vector.multi_reduction <add>, %97, %cst_31 [0] : vector<8x128xf32> to vector<128xf32>
    %99 = vector.shape_cast %98 : vector<128xf32> to vector<1x128xf32>
    %cst_32 = arith.constant 8.000000e+00 : f32
    %100 = vector.broadcast %cst_32 : f32 to vector<1x128xf32>
    %101 = arith.divf %99, %100 : vector<1x128xf32>
    %102 = arith.mulf %96, %96 : vector<1x128xf32>
    %103 = arith.subf %101, %102 : vector<1x128xf32>
    %cst_33 = arith.constant 9.99999974E-6 : f32
    %104 = vector.broadcast %cst_33 : f32 to vector<1x128xf32>
    %105 = arith.addf %103, %104 : vector<1x128xf32>
    %106 = math.rsqrt %105 : vector<1x128xf32>
    %107 = arith.mulf %91, %106 : vector<1x128xf32>
    %108 = arith.mulf %96, %107 : vector<1x128xf32>
    %109 = arith.subf %92, %108 : vector<1x128xf32>
    %110 = vector.broadcast %107 : vector<1x128xf32> to vector<8x128xf32>
    %111 = arith.mulf %90, %110 : vector<8x128xf32>
    %112 = vector.broadcast %109 : vector<1x128xf32> to vector<8x128xf32>
    %113 = arith.addf %111, %112 : vector<8x128xf32>
    %cst_34 = arith.constant 0.00999999977 : f32
    %114 = vector.broadcast %cst_34 : f32 to vector<8x128xf32>
    %115 = arith.mulf %114, %113 : vector<8x128xf32>
    %116 = arith.maximumf %113, %115 : vector<8x128xf32>
    %117 = arith.truncf %116 : vector<8x128xf32> to vector<8x128xbf16>
    %c0_35 = arith.constant 0 : index
    %c512 = arith.constant 512 : index
    %118 = vector.load %arg1[%c0_35, %c512] : memref<128x640xbf16, #tpu.memory_space<vmem>>, vector<128x128xbf16>
    %cst_36 = arith.constant dense<0.000000e+00> : vector<8x128xf32>
    %119 = tpu.matmul %117, %118, %cst_36 {dimension_numbers = #tpu.dot_dimension_numbers<[1], [0], [0], [1], [0, 0, 1, 1], [], []>} : vector<8x128xbf16>, vector<128x128xbf16>, vector<8x128xf32> -> vector<8x128xf32>
    %120 = vector.extract_strided_slice %0 {offsets = [8, 0], sizes = [1, 128], strides = [1, 1]} : vector<16x128xf32> to vector<1x128xf32>
    %121 = vector.broadcast %120 : vector<1x128xf32> to vector<8x128xf32>
    %122 = arith.addf %119, %121 : vector<8x128xf32>
    %c0_37 = arith.constant 0 : index
    %c0_38 = arith.constant 0 : index
    %123 = vector.load %arg3[%c0_37, %c0_38] : memref<8x128xf32, #tpu.memory_space<vmem>>, vector<8x128xf32>
    tpu.vector_store %arg3[%c0_37, %c0_38], %122 {strides = array<i32>} : memref<8x128xf32, #tpu.memory_space<vmem>>, vector<8x128xf32>,
    return
  }
}

</mosaic_0001>

<bundles_post_ra>
// kernel: qnetwork_forward.1
= control target key start
LH: loop header
LB: loop body
LE: loop exit
PB: predicated region body
PF: predicated region fallthrough
CT: control target
= control target key end

     0   :  { %8 = vsyncpa [#allocation3], 0  ;;  %s977_s12 = smov [#allocation2]   ;;  %s1100_s0 = inlined_call_operand.vmem [shape: bf16[8,128], index: 0, kind: input, shape index: {}]   ;;  %s1101_s1 = inlined_call_operand.hbm [shape: bf16[128,640], index: 1, kind: input, shape index: {}]   ;;  %s1102_s2 = inlined_call_operand.vmem [shape: f32[16,128], index: 2, kind: input, shape index: {}]   ;;  %s1103_s3 = inlined_call_operand.vmem [shape: f32[8,128], index: 3, kind: output, shape index: {}]  }
   0x1   :  { %s16_s13 = sshll.u32 %s977_s12, 4  ;;  %s953_s16 = scalar_lea.hbm %s1101_s1, 5120  ;;  %s17_s13 = int_to_ptr.vmem [resolvable:$true] %s16_s13 }
   0x2   :  { %p954_p0 = scmp.ne.s32.totalorder %s1101_s1, %s953_s16  ;;  %p957_p1 = scmp.lt.u32.totalorder %s953_s16, %s1101_s1 }
   0x4   :  { %p959_p2 = pnand %p957_p1, %p954_p0 }
   0x6   :  { %962 = shalt.err (!%p959_p2)
}
   0x7   :  { %s963_s21 = scalar_lea.vmem %s17_s13, 5120  ;;  %p968_p4 = scmp.lt.s32.totalorder %s17_s13, %s17_s13 }
   0x8   :  { %p964_p3 = scmp.ne.s32.totalorder %s17_s13, %s963_s21  ;;  %p969_p5 = scmp.lt.s32.totalorder %s963_s21, %s963_s21 }
   0xa   :  { %p970_p6 = por %p969_p5, %p968_p4 }
   0xc   :  { %p971_p7 = pnand %p970_p6, %p964_p3 }
   0xe   :  { %974 = shalt.err (!%p971_p7)
}
   0xf   :  { %s978_s22 = smov 320   ;;  %s979_s23 = smov 20  }
  0x10   :  { %22 = dma.hbm_to_vmem [thread:$0]  %s1101_s1, 5120, %s17_s13, [#allocation3], %s978_s22, %s978_s22, %s979_s23  }
  0x11   :  { %975 = dma.done.wait [#allocation3], 5120  }
  0x12   :  { %976 = vsyncadd [#allocation3], 4294962176  ;;  %v980_v0 = vmov 0.0   ;;  %vm981_vm0 = vmmov 0   ;;  %v905_v1 = vld [vmem:[#allocation2] ss:$20 sps:$4 sm:$0xff]   ;;  %v162_v40 = vlaneseq }
  0x13   :  { %800 = vmatprep.subr.bf16.mxu0 %v980_v0  ;;  %816 = vmatprep.mubr.msk.bf16.mxu0 %vm981_vm0, %v980_v0  ;;  %v906_v2 = vld [vmem:[#allocation2 + $0x28] ss:$20 sps:$4 sm:$0xff]   ;;  %v907_v3 = vld [vmem:[#allocation2 + $0x50] ss:$20 sps:$4 sm:$0xff]   ;;  %v908_v4 = vld [vmem:[#allocation2 + $0x78] ss:$20 sps:$4 sm:$0xff]  }
  0x14   :  { %820 = vmatprep.subr.bf16.mxu1 %v980_v0  ;;  %836 = vmatprep.mubr.msk.bf16.mxu1 %vm981_vm0, %v980_v0  ;;  %v909_v5 = vld [vmem:[#allocation2 + $0xa0] ss:$20 sps:$4 sm:$0xff]   ;;  %v910_v6 = vld [vmem:[#allocation2 + $0xc8] ss:$20 sps:$4 sm:$0xff]   ;;  %v911_v7 = vld [vmem:[#allocation2 + $0xf0] ss:$20 sps:$4 sm:$0xff]  }
  0x15   :  { %801 = vmatpush3.bf16.msra.mxu0 %v905_v1  ;;  %v912_v8 = vld [vmem:[#allocation2 + $0x118] ss:$20 sps:$4 sm:$0xff]   ;;  %v31_v9 = vld [vmem:[%s1100_s0] sm:$0xf]  ;;  %v915_v12 = vld [vmem:[#allocation2 + $0x54] ss:$20 sps:$4 sm:$0xff]  }
  0x16   :  { %802 = vmatprep.subr.bf16.mxu0 %v980_v0  ;;  %v913_v10 = vld [vmem:[#allocation2 + $0x4] ss:$20 sps:$4 sm:$0xff]   ;;  %v914_v11 = vld [vmem:[#allocation2 + $0x2c] ss:$20 sps:$4 sm:$0xff]   ;;  %v916_v13 = vld [vmem:[#allocation2 + $0x7c] ss:$20 sps:$4 sm:$0xff]  }
  0x17   :  { %821 = vmatpush3.bf16.msra.mxu1 %v913_v10  ;;  %v917_v14 = vld [vmem:[#allocation2 + $0xa4] ss:$20 sps:$4 sm:$0xff]   ;;  %v918_v15 = vld [vmem:[#allocation2 + $0xcc] ss:$20 sps:$4 sm:$0xff]   ;;  %v919_v16 = vld [vmem:[#allocation2 + $0xf4] ss:$20 sps:$4 sm:$0xff]  }
  0x18   :  { %822 = vmatprep.subr.bf16.mxu1 %v980_v0  ;;  %v920_v17 = vld [vmem:[#allocation2 + $0x11c] ss:$20 sps:$4 sm:$0xff]   ;;  %v1041_v41 = vshrl.u32 %v162_v40, 7  ;;  %v1046_v42 = vld [vmem:[%s1102_s2] sm:$0xff]  ;;  %v923_v59 = vld [vmem:[#allocation2 + $0x58] ss:$20 sps:$4 sm:$0xff]  }
  0x19   :  { %803 = vmatpush3.bf16.msra.mxu0 %v906_v2  ;;  %v921_v57 = vld [vmem:[#allocation2 + $0x8] ss:$20 sps:$4 sm:$0xff]   ;;  %v922_v58 = vld [vmem:[#allocation2 + $0x30] ss:$20 sps:$4 sm:$0xff]   ;;  %v924_v60 = vld [vmem:[#allocation2 + $0x80] ss:$20 sps:$4 sm:$0xff]  }
  0x1a   :  { %804 = vmatprep.subr.bf16.mxu0 %v980_v0  ;;  %v164_v45 = vsub.s32 0, %v1041_v41  ;;  %v169_v49 = vsub.s32 1, %v1041_v41  ;;  %v925_v61 = vld [vmem:[#allocation2 + $0xa8] ss:$20 sps:$4 sm:$0xff]   ;;  %v926_v62 = vld [vmem:[#allocation2 + $0xd0] ss:$20 sps:$4 sm:$0xff]  }
  0x1b   :  { %823 = vmatpush3.bf16.msra.mxu1 %v914_v11  ;;  %v927_v63 = vld [vmem:[#allocation2 + $0xf8] ss:$20 sps:$4 sm:$0xff]   ;;  %v928_v1 = vld [vmem:[#allocation2 + $0x120] ss:$20 sps:$4 sm:$0xff]   ;;  %v931_v40 = vld [vmem:[#allocation2 + $0x5c] ss:$20 sps:$4 sm:$0xff]  }
  0x1c   :  { %824 = vmatprep.subr.bf16.mxu1 %v980_v0 }
  0x1d   :  { %805 = vmatpush3.bf16.msra.mxu0 %v907_v3 }
  0x1e   :  { %806 = vmatprep.subr.bf16.mxu0 %v980_v0 }
  0x1f   :  { %825 = vmatpush3.bf16.msra.mxu1 %v915_v12 }
  0x20   :  { %826 = vmatprep.subr.bf16.mxu1 %v980_v0 }
  0x21   :  { %807 = vmatpush3.bf16.msra.mxu0 %v908_v4 }
  0x22   :  { %808 = vmatprep.subr.bf16.mxu0 %v980_v0 }
  0x23   :  { %827 = vmatpush3.bf16.msra.mxu1 %v916_v13 }
  0x24   :  { %828 = vmatprep.subr.bf16.mxu1 %v980_v0 }
  0x25   :  { %809 = vmatpush3.bf16.msra.mxu0 %v909_v5 }
  0x26   :  { %810 = vmatprep.subr.bf16.mxu0 %v980_v0 }
  0x27   :  { %829 = vmatpush3.bf16.msra.mxu1 %v917_v14 }
  0x28   :  { %830 = vmatprep.subr.bf16.mxu1 %v980_v0 }
  0x29   :  { %811 = vmatpush3.bf16.msra.mxu0 %v910_v6 }
  0x2a   :  { %812 = vmatprep.subr.bf16.mxu0 %v980_v0 }
  0x2b   :  { %831 = vmatpush3.bf16.msra.mxu1 %v918_v15 }
  0x2c   :  { %832 = vmatprep.subr.bf16.mxu1 %v980_v0 }
  0x2d   :  { %813 = vmatpush3.bf16.msra.mxu0 %v911_v7 }
  0x2e   :  { %814 = vmatprep.subr.bf16.mxu0 %v980_v0 }
  0x2f   :  { %833 = vmatpush3.bf16.msra.mxu1 %v919_v16 }
  0x30   :  { %834 = vmatprep.subr.bf16.mxu1 %v980_v0 }
  0x31   :  { %815 = vmatpush3.bf16.msra.mxu0 %v912_v8 }
  0x32   :  { %840 = vmatprep.subr.bf16.mxu0 %v980_v0 }
  0x33   :  { %835 = vmatpush3.bf16.msra.mxu1 %v920_v17 }
  0x34   :  { %817 = vmatmul.mubr.bf16.vlgmr.msra.gmra.mrb[0].mxu0 %v31_v9  ;;  %860 = vmatprep.subr.bf16.mxu1 %v980_v0 }
  0x35   :  { %856 = vmatprep.mubr.msk.bf16.mxu0 %vm981_vm0, %v980_v0  ;;  %841 = vmatpush3.bf16.msra.mxu0 %v921_v57 }
  0x36   :  { %842 = vmatprep.subr.bf16.mxu0 %v980_v0 }
  0x39   :  { %843 = vmatpush3.bf16.msra.mxu0 %v922_v58 }
  0x3a   :  { %844 = vmatprep.subr.bf16.mxu0 %v980_v0 }
  0x3d   :  { %845 = vmatpush3.bf16.msra.mxu0 %v923_v59 }
  0x3e   :  { %846 = vmatprep.subr.bf16.mxu0 %v980_v0 }
  0x41   :  { %847 = vmatpush3.bf16.msra.mxu0 %v924_v60 }
  0x42   :  { %848 = vmatprep.subr.bf16.mxu0 %v980_v0 }
  0x45   :  { %849 = vmatpush3.bf16.msra.mxu0 %v925_v61 }
  0x46   :  { %850 = vmatprep.subr.bf16.mxu0 %v980_v0 }
  0x49   :  { %851 = vmatpush3.bf16.msra.mxu0 %v926_v62 }
  0x4a   :  { %852 = vmatprep.subr.bf16.mxu0 %v980_v0 }
  0x4d   :  { %853 = vmatpush3.bf16.msra.mxu0 %v927_v63 }
  0x4e   :  { %854 = vmatprep.subr.bf16.mxu0 %v980_v0 }
  0x51   :  { %855 = vmatpush3.bf16.msra.mxu0 %v928_v1 }
  0x52   :  { %880 = vmatprep.subr.bf16.mxu0 %v980_v0 }
 0x107   :  { %v130_v18 = vpop.f32.mrb[0].mxu0 }
 0x108   :  { %v136_v19 = vrot.slane %v130_v18, 4  ;;  %v144_v20 = vmul.f32 %v130_v18, %v130_v18  ;;  %v818_v21 = vpop.f32.mrb[1].mxu0 }
 0x109   :  { %v133_v22 = vpop.f32.mrb[2].mxu0 }
 0x10a   :  { %v137_v23 = vadd.f32 %v136_v19, %v130_v18  ;;  %v145_v24 = vrot.slane %v144_v20, 4  ;;  %v819_v25 = vpop.f32.mrb[3].mxu0 }
 0x10c   :  { %v138_v26 = vrot.slane %v137_v23, 2  ;;  %v146_v27 = vadd.f32 %v145_v24, %v144_v20 }
 0x10e   :  { %v139_v28 = vadd.f32 %v138_v26, %v137_v23  ;;  %v147_v29 = vrot.slane %v146_v27, 2  ;;  %v306_v26 = vsub.s32 2, %v1041_v41 }
 0x110   :  { %v140_v30 = vrot.slane %v139_v28, 1  ;;  %v148_v31 = vadd.f32 %v147_v29, %v146_v27 }
 0x112   :  { %v141_v32 = vadd.f32 %v140_v30, %v139_v28  ;;  %v149_v33 = vrot.slane %v148_v31, 1  ;;  %v311_v30 = vsub.s32 3, %v1041_v41 }
 0x114   :  { %v143_v34 = vmul.f32 0.125, %v141_v32  ;;  %v150_v35 = vadd.f32 %v149_v33, %v148_v31 }
 0x116   :  { %v151_v36 = vmul.f32 0.125, %v150_v35  ;;  %v152_v37 = vmul.f32 %v143_v34, %v143_v34 }
 0x118   :  { %v153_v38 = vsub.f32 %v151_v36, %v152_v37 }
 0x11a   :  { %v154_v39 = vadd.f32 1e-05, %v153_v38  ;;  %v929_v38 = vld [vmem:[#allocation2 + $0xc] ss:$20 sps:$4 sm:$0xff]  }
 0x11c   :  { %945 = vrsqrt.f32 %v154_v39  ;;  %v930_v39 = vld [vmem:[#allocation2 + $0x34] ss:$20 sps:$4 sm:$0xff]  }
 0x126   :  { %v946_v43 = vpop.eup %945 }
 0x127   :  { %v156_v44 = vmul.f32 %v946_v43, %v1046_v42  ;;  %v932_v43 = vld [vmem:[#allocation2 + $0x84] ss:$20 sps:$4 sm:$0xff]  }
 0x129   :  { %v157_v46 = vmul.f32 %v156_v44, %v143_v34  ;;  %v165_v48 = vrot.slane %v156_v44, %v164_v45  ;;  %v933_v44 = vld [vmem:[#allocation2 + $0xac] ss:$20 sps:$4 sm:$0xff]  }
 0x12b   :  { %v159_v47 = vrot.slane %v157_v46, 7  ;;  %v166_v51 = vmul.f32 %v165_v48, %v130_v18  ;;  %v934_v46 = vld [vmem:[#allocation2 + $0xd4] ss:$20 sps:$4 sm:$0xff]   ;;  %v936_v48 = vld [vmem:[#allocation2 + $0x124] ss:$20 sps:$4 sm:$0xff]  }
 0x12d   :  { %v161_v50 = vsub.f32 %v1046_v42, %v159_v47  ;;  %v935_v47 = vld [vmem:[#allocation2 + $0xfc] ss:$20 sps:$4 sm:$0xff]  }
 0x12f   :  { %v170_v52 = vrot.slane %v161_v50, %v169_v49 }
 0x131   :  { %v171_v53 = vadd.f32 %v170_v52, %v166_v51 }
 0x133   :  { %v172_v54 = vmul.f32 0.01, %v171_v53 }
 0x135   :  { %v173_v55 = vmax.f32 %v171_v53, %v172_v54 }
 0x137   :  { %v174_v56 = vpack.c.bf16 %v173_v55, %v173_v55 }
 0x139   :  { %837 = vmatmul.mubr.bf16.vlgmr.msra.gmra.mrb[0].mxu1 %v174_v56 }
 0x13a   :  { %876 = vmatprep.mubr.msk.bf16.mxu1 %vm981_vm0, %v980_v0  ;;  %861 = vmatpush3.bf16.msra.mxu1 %v929_v38 }
 0x13b   :  { %862 = vmatprep.subr.bf16.mxu1 %v980_v0 }
 0x13e   :  { %863 = vmatpush3.bf16.msra.mxu1 %v930_v39 }
 0x13f   :  { %864 = vmatprep.subr.bf16.mxu1 %v980_v0 }
 0x142   :  { %865 = vmatpush3.bf16.msra.mxu1 %v931_v40 }
 0x143   :  { %866 = vmatprep.subr.bf16.mxu1 %v980_v0 }
 0x146   :  { %867 = vmatpush3.bf16.msra.mxu1 %v932_v43 }
 0x147   :  { %868 = vmatprep.subr.bf16.mxu1 %v980_v0 }
 0x14a   :  { %869 = vmatpush3.bf16.msra.mxu1 %v933_v44 }
 0x14b   :  { %870 = vmatprep.subr.bf16.mxu1 %v980_v0 }
 0x14e   :  { %871 = vmatpush3.bf16.msra.mxu1 %v934_v46 }
 0x14f   :  { %872 = vmatprep.subr.bf16.mxu1 %v980_v0 }
 0x152   :  { %873 = vmatpush3.bf16.msra.mxu1 %v935_v47 }
 0x153   :  { %874 = vmatprep.subr.bf16.mxu1 %v980_v0 }
 0x156   :  { %875 = vmatpush3.bf16.msra.mxu1 %v936_v48 }
 0x20c   :  { %v273_v2 = vpop.f32.mrb[0].mxu1 }
 0x20d   :  { %v279_v3 = vrot.slane %v273_v2, 4  ;;  %v286_v4 = vmul.f32 %v273_v2, %v273_v2  ;;  %v838_v5 = vpop.f32.mrb[1].mxu1 }
 0x20e   :  { %v276_v6 = vpop.f32.mrb[2].mxu1 }
 0x20f   :  { %v280_v7 = vadd.f32 %v279_v3, %v273_v2  ;;  %v287_v8 = vrot.slane %v286_v4, 4  ;;  %v839_v9 = vpop.f32.mrb[3].mxu1 }
 0x211   :  { %v281_v10 = vrot.slane %v280_v7, 2  ;;  %v288_v11 = vadd.f32 %v287_v8, %v286_v4 }
 0x213   :  { %v282_v12 = vadd.f32 %v281_v10, %v280_v7  ;;  %v289_v13 = vrot.slane %v288_v11, 2  ;;  %v448_v10 = vsub.s32 4, %v1041_v41 }
 0x215   :  { %v283_v14 = vrot.slane %v282_v12, 1  ;;  %v290_v15 = vadd.f32 %v289_v13, %v288_v11 }
 0x217   :  { %v284_v16 = vadd.f32 %v283_v14, %v282_v12  ;;  %v291_v17 = vrot.slane %v290_v15, 1  ;;  %v453_v14 = vsub.s32 5, %v1041_v41 }
 0x219   :  { %v285_v18 = vmul.f32 0.125, %v284_v16  ;;  %v292_v19 = vadd.f32 %v291_v17, %v290_v15 }
 0x21b   :  { %v293_v20 = vmul.f32 0.125, %v292_v19  ;;  %v294_v21 = vmul.f32 %v285_v18, %v285_v18 }
 0x21d   :  { %v295_v22 = vsub.f32 %v293_v20, %v294_v21 }
 0x21f   :  { %v296_v23 = vadd.f32 1e-05, %v295_v22  ;;  %v937_v22 = vld [vmem:[#allocation2 + $0x10] ss:$20 sps:$4 sm:$0xff]  }
 0x221   :  { %947 = vrsqrt.f32 %v296_v23  ;;  %v938_v23 = vld [vmem:[#allocation2 + $0x38] ss:$20 sps:$4 sm:$0xff]  }
 0x22b   :  { %v948_v24 = vpop.eup %947 }
 0x22c   :  { %v298_v25 = vmul.f32 %v948_v24, %v1046_v42  ;;  %v939_v24 = vld [vmem:[#allocation2 + $0x60] ss:$20 sps:$4 sm:$0xff]  }
 0x22e   :  { %v299_v27 = vmul.f32 %v298_v25, %v285_v18  ;;  %v307_v29 = vrot.slane %v298_v25, %v306_v26  ;;  %v940_v25 = vld [vmem:[#allocation2 + $0x88] ss:$20 sps:$4 sm:$0xff]   ;;  %v941_v26 = vld [vmem:[#allocation2 + $0xb0] ss:$20 sps:$4 sm:$0xff]  }
 0x230   :  { %v301_v28 = vrot.slane %v299_v27, 7  ;;  %v308_v32 = vmul.f32 %v307_v29, %v273_v2  ;;  %v942_v27 = vld [vmem:[#allocation2 + $0xd8] ss:$20 sps:$4 sm:$0xff]   ;;  %v944_v29 = vld [vmem:[#allocation2 + $0x128] ss:$20 sps:$4 sm:$0xff]  }
 0x232   :  { %v303_v31 = vsub.f32 %v1046_v42, %v301_v28  ;;  %v943_v28 = vld [vmem:[#allocation2 + $0x100] ss:$20 sps:$4 sm:$0xff]  }
 0x234   :  { %v312_v33 = vrot.slane %v303_v31, %v311_v30 }
 0x236   :  { %v313_v34 = vadd.f32 %v312_v33, %v308_v32 }
 0x238   :  { %v314_v35 = vmul.f32 0.01, %v313_v34 }
 0x23a   :  { %v315_v36 = vmax.f32 %v313_v34, %v314_v35 }
 0x23c   :  { %v316_v37 = vpack.c.bf16 %v315_v36, %v315_v36 }
 0x23e   :  { %857 = vmatmul.mubr.bf16.vlgmr.msra.gmra.mrb[4].mxu0 %v316_v37 }
 0x23f   :  { %896 = vmatprep.mubr.msk.bf16.mxu0 %vm981_vm0, %v980_v0  ;;  %881 = vmatpush3.bf16.msra.mxu0 %v937_v22 }
 0x240   :  { %882 = vmatprep.subr.bf16.mxu0 %v980_v0 }
 0x243   :  { %883 = vmatpush3.bf16.msra.mxu0 %v938_v23 }
 0x244   :  { %884 = vmatprep.subr.bf16.mxu0 %v980_v0 }
 0x247   :  { %885 = vmatpush3.bf16.msra.mxu0 %v939_v24 }
 0x248   :  { %886 = vmatprep.subr.bf16.mxu0 %v980_v0 }
 0x24b   :  { %887 = vmatpush3.bf16.msra.mxu0 %v940_v25 }
 0x24c   :  { %888 = vmatprep.subr.bf16.mxu0 %v980_v0 }
 0x24f   :  { %889 = vmatpush3.bf16.msra.mxu0 %v941_v26 }
 0x250   :  { %890 = vmatprep.subr.bf16.mxu0 %v980_v0 }
 0x253   :  { %891 = vmatpush3.bf16.msra.mxu0 %v942_v27 }
 0x254   :  { %892 = vmatprep.subr.bf16.mxu0 %v980_v0 }
 0x257   :  { %893 = vmatpush3.bf16.msra.mxu0 %v943_v28 }
 0x258   :  { %894 = vmatprep.subr.bf16.mxu0 %v980_v0 }
 0x25b   :  { %895 = vmatpush3.bf16.msra.mxu0 %v944_v29 }
 0x311   :  { %v415_v49 = vpop.f32.mrb[4].mxu0 }
 0x312   :  { %v421_v50 = vrot.slane %v415_v49, 4  ;;  %v428_v51 = vmul.f32 %v415_v49, %v415_v49  ;;  %v858_v52 = vpop.f32.mrb[5].mxu0 }
 0x313   :  { %v418_v53 = vpop.f32.mrb[6].mxu0 }
 0x314   :  { %v422_v54 = vadd.f32 %v421_v50, %v415_v49  ;;  %v429_v55 = vrot.slane %v428_v51, 4  ;;  %v859_v56 = vpop.f32.mrb[7].mxu0 }
 0x315   :  { %v590_v56 = vsub.s32 6, %v1041_v41 }
 0x316   :  { %v423_v57 = vrot.slane %v422_v54, 2  ;;  %v430_v58 = vadd.f32 %v429_v55, %v428_v51 }
 0x318   :  { %v424_v59 = vadd.f32 %v423_v57, %v422_v54  ;;  %v431_v60 = vrot.slane %v430_v58, 2 }
 0x31a   :  { %v425_v61 = vrot.slane %v424_v59, 1  ;;  %v432_v62 = vadd.f32 %v431_v60, %v430_v58  ;;  %v595_v60 = vsub.s32 7, %v1041_v41 }
 0x31c   :  { %v426_v63 = vadd.f32 %v425_v61, %v424_v59  ;;  %v433_v1 = vrot.slane %v432_v62, 1 }
 0x31e   :  { %v427_v2 = vmul.f32 0.125, %v426_v63  ;;  %v434_v3 = vadd.f32 %v433_v1, %v432_v62 }
 0x320   :  { %v435_v4 = vmul.f32 0.125, %v434_v3  ;;  %v436_v5 = vmul.f32 %v427_v2, %v427_v2 }
 0x322   :  { %v437_v6 = vsub.f32 %v435_v4, %v436_v5  ;;  %v30_v5 = vld [vmem:[%s1102_s2 + $0x8] sm:$0xff] }
 0x324   :  { %v438_v7 = vadd.f32 1e-05, %v437_v6  ;;  %v620_v6 = vrot.slane %v30_v5, %v164_v45 }
 0x326   :  { %949 = vrsqrt.f32 %v438_v7 }
 0x330   :  { %v950_v8 = vpop.eup %949 }
 0x331   :  { %v440_v9 = vmul.f32 %v950_v8, %v1046_v42 }
 0x333   :  { %v441_v11 = vmul.f32 %v440_v9, %v427_v2  ;;  %v449_v13 = vrot.slane %v440_v9, %v448_v10 }
 0x335   :  { %v443_v12 = vrot.slane %v441_v11, 7  ;;  %v450_v16 = vmul.f32 %v449_v13, %v415_v49 }
 0x337   :  { %v445_v15 = vsub.f32 %v1046_v42, %v443_v12 }
 0x339   :  { %v454_v17 = vrot.slane %v445_v15, %v453_v14 }
 0x33b   :  { %v455_v18 = vadd.f32 %v454_v17, %v450_v16 }
 0x33d   :  { %v456_v19 = vmul.f32 0.01, %v455_v18 }
 0x33f   :  { %v457_v20 = vmax.f32 %v455_v18, %v456_v19 }
 0x341   :  { %v458_v21 = vpack.c.bf16 %v457_v20, %v457_v20 }
 0x343   :  { %877 = vmatmul.mubr.bf16.vlgmr.msra.gmra.mrb[4].mxu1 %v458_v21 }
 0x416   :  { %v557_v30 = vpop.f32.mrb[4].mxu1 }
 0x417   :  { %v563_v31 = vrot.slane %v557_v30, 4  ;;  %v570_v32 = vmul.f32 %v557_v30, %v557_v30  ;;  %v878_v33 = vpop.f32.mrb[5].mxu1 }
 0x418   :  { %v560_v34 = vpop.f32.mrb[6].mxu1 }
 0x419   :  { %v564_v35 = vadd.f32 %v563_v31, %v557_v30  ;;  %v571_v36 = vrot.slane %v570_v32, 4  ;;  %v879_v37 = vpop.f32.mrb[7].mxu1 }
 0x41b   :  { %v565_v38 = vrot.slane %v564_v35, 2  ;;  %v572_v39 = vadd.f32 %v571_v36, %v570_v32 }
 0x41d   :  { %v566_v40 = vadd.f32 %v565_v38, %v564_v35  ;;  %v573_v43 = vrot.slane %v572_v39, 2 }
 0x41f   :  { %v567_v44 = vrot.slane %v566_v40, 1  ;;  %v574_v46 = vadd.f32 %v573_v43, %v572_v39 }
 0x421   :  { %v568_v47 = vadd.f32 %v567_v44, %v566_v40  ;;  %v575_v48 = vrot.slane %v574_v46, 1 }
 0x423   :  { %v569_v49 = vmul.f32 0.125, %v568_v47  ;;  %v576_v0 = vadd.f32 %v575_v48, %v574_v46 }
 0x425   :  { %v577_v50 = vmul.f32 0.125, %v576_v0  ;;  %v578_v51 = vmul.f32 %v569_v49, %v569_v49 }
 0x427   :  { %v579_v52 = vsub.f32 %v577_v50, %v578_v51 }
 0x429   :  { %v580_v53 = vadd.f32 1e-05, %v579_v52 }
 0x42b   :  { %951 = vrsqrt.f32 %v580_v53 }
 0x435   :  { %v952_v54 = vpop.eup %951 }
 0x436   :  { %v582_v55 = vmul.f32 %v952_v54, %v1046_v42 }
 0x438   :  { %v583_v57 = vmul.f32 %v582_v55, %v569_v49  ;;  %v591_v59 = vrot.slane %v582_v55, %v590_v56 }
 0x43a   :  { %v585_v58 = vrot.slane %v583_v57, 7  ;;  %v592_v62 = vmul.f32 %v591_v59, %v557_v30 }
 0x43c   :  { %v587_v61 = vsub.f32 %v1046_v42, %v585_v58 }
 0x43e   :  { %v596_v63 = vrot.slane %v587_v61, %v595_v60 }
 0x440   :  { %v597_v1 = vadd.f32 %v596_v63, %v592_v62 }
 0x442   :  { %v598_v2 = vmul.f32 0.01, %v597_v1 }
 0x444   :  { %v599_v3 = vmax.f32 %v597_v1, %v598_v2 }
 0x446   :  { %v600_v4 = vpack.c.bf16 %v599_v3, %v599_v3 }
 0x448   :  { %897 = vmatmul.mubr.bf16.vlgmr.msra.gmra.mrb[8].mxu0 %v600_v4 }
 0x51b   :  { %v703_v7 = vpop.f32.mrb[8].mxu0 }
 0x51c   :  { %v704_v8 = vadd.f32 %v703_v7, %v620_v6  ;;  %v898_v9 = vpop.f32.mrb[9].mxu0 }
 0x51d   :  { %v706_v10 = vpop.f32.mrb[10].mxu0 }
 0x51e   :  { %709 = vst [vmem:[%s1103_s3] sm:$0xff] %v704_v8  ;;  %v899_v42 = vpop.f32.mrb[11].mxu0 }
 0x51f   :  { %714 = vsyncpa [#allocation3], 1 }

</bundles_post_ra>
